<compile_context>
chip_gen: v6e
topology: v6e:2x2x1
jax: 0.10.0
libtpu: 0.0.40
codegen_flags: <defaults>
</compile_context>

<pallas_src>
import functools

import jax
import jax.numpy as jnp
from jax.experimental import pallas as pl
from jax.experimental.pallas import tpu as pltpu


# ----------------------------------------------------------------------------
# Patch-buffer ("P") row layout: one segment of 9*C rows per source feature
# map, in the channel order of E_3 = cat(out7,out8,out9,x, out4,out5,out6,x,
# out1,out2,out3,x).  Inside a segment rows are tap-major / channel-minor
# (row = tap*C + c, tap = kh*3 + kw).  The 27-row x segments are padded to 32
# rows (matching weight columns are zero) so every segment offset is a
# multiple of 16 rows -> aligned (16,128) bf16 tiles for all stores/loads.
# Then:  E_3 patches = P[0:1392],  E_2 = P[464:1392],  E_1 = P[928:1392].
# ----------------------------------------------------------------------------
_R16 = 9 * 16          # 144 patch rows per 16-channel feature map
_RX = 32               # 9 * 3 = 27 x-patch rows, padded to 32

_OFF_OUT7, _OFF_OUT8, _OFF_OUT9 = 0, 144, 288
_OFF_XA = 432
_OFF_OUT4, _OFF_OUT5, _OFF_OUT6 = 464, 608, 752
_OFF_XB = 896
_OFF_OUT1, _OFF_OUT2, _OFF_OUT3 = 928, 1072, 1216
_OFF_XC = 1360
_P_ROWS = 1392
_E1_OFF = _OFF_OUT1    # E_1 block starts here
_E2_OFF = _OFF_OUT4    # E_2 block starts here


# ----------------------------------------------------------------------------
# pltpu.roll direction probe (one tiny kernel, resolved once per process).
# Trace-safe: runs eagerly even if first called while tracing.
# ----------------------------------------------------------------------------
_ROLL_SIGN_CACHE = []


def _resolve_roll_sign():
    """s in {+1,-1} s.t. pltpu.roll(f, (s*d) % n, ax)[..., i] == f[..., (i+d) % n]."""
    if not _ROLL_SIGN_CACHE:
        def probe_kernel(x_ref, o_ref):
            o_ref[...] = pltpu.roll(x_ref[...], 1, 1)

        with jax.ensure_compile_time_eval():
            col = jax.lax.broadcasted_iota(jnp.float32, (8, 128), 1)
            rolled = pl.pallas_call(
                probe_kernel,
                out_shape=jax.ShapeDtypeStruct((8, 128), jnp.float32),
            )(col)
            v00 = float(jax.device_get(rolled)[0, 0])
        # jnp.roll convention => rolled[0,0] == 127 ; the other => 1.
        _ROLL_SIGN_CACHE.append(-1 if v00 > 64.0 else 1)
    return _ROLL_SIGN_CACHE[0]


# ----------------------------------------------------------------------------
# Fused UWCNN kernel: one grid step = `btile` images packed along the lanes.
# ----------------------------------------------------------------------------
def _uwcnn_kernel(x_ref, w_in_ref, b_in_ref, w_c_ref, b_c_ref,
                  w1_ref, b1_ref, w2_ref, b2_ref, w_o_ref, b_o_ref,
                  o_ref, p_ref, *, H, W, btile, roll_sign, cdtype):
    HW = H * W
    LANES = btile * HW

    # --- boundary masks for the 8 non-center taps, built once ----------------
    hh = jax.lax.broadcasted_iota(jnp.int32, (btile, H, W), 1).reshape(1, LANES)
    ww = jax.lax.broadcasted_iota(jnp.int32, (btile, H, W), 2).reshape(1, LANES)
    masks = {}
    for kh in range(3):
        for kw in range(3):
            if kh == 1 and kw == 1:
                continue
            terms = []
            if kh == 0:
                terms.append(hh >= 1)
            elif kh == 2:
                terms.append(hh <= H - 2)
            if kw == 0:
                terms.append(ww >= 1)
            elif kw == 2:
                terms.append(ww <= W - 2)
            m = terms[0]
            for t in terms[1:]:
                m = m & t
            masks[(kh, kw)] = m

    def tap(f, kh, kw):
        """Zero-padded 3x3 tap (kh,kw) of feature map f (C, LANES), f32.

        Cross-image wrap from the roll is always masked out, because a lane
        whose shifted source crosses an image boundary is exactly a lane whose
        (h+oy, w+ox) is out of bounds."""
        delta = (kh - 1) * W + (kw - 1)
        v = f if delta == 0 else pltpu.roll(f, (roll_sign * delta) % LANES, 1)
        if kh == 1 and kw == 1:
            return v                      # center tap: mask is all-true
        return jnp.where(masks[(kh, kw)], v, 0.0)

    def scatter_taps(f, seg_off):
        """Write the 9 taps of a 16-channel map straight into p_ref rows
        [seg_off, seg_off + 144), tap-major / channel-minor, as cdtype.
        All offsets are multiples of 16 rows -> aligned bf16 stores."""
        for kh in range(3):
            for kw in range(3):
                r = seg_off + (kh * 3 + kw) * 16
                p_ref[r:r + 16, :] = tap(f, kh, kw).astype(cdtype)

    def conv(w_r, b_r, patches, relu=True):
        acc = jnp.dot(w_r[...], patches, preferred_element_type=jnp.float32)
        acc = acc + b_r[...]
        return jnp.maximum(acc, 0.0) if relu else acc

    x = x_ref[0]                                            # (3, LANES), f32

    # x patches (27 rows + 5 zero pad rows), stored at all three x slots.
    # Built in registers (tiny) so the 3-row taps never hit unaligned stores.
    px = jnp.concatenate(
        [tap(x, kh, kw) for kh in range(3) for kw in range(3)]
        + [jnp.zeros((_RX - 27, LANES), jnp.float32)], axis=0).astype(cdtype)
    p_ref[_OFF_XA:_OFF_XA + _RX, :] = px
    p_ref[_OFF_XB:_OFF_XB + _RX, :] = px
    p_ref[_OFF_XC:_OFF_XC + _RX, :] = px

    # --- block 1 --------------------------------------------------------------
    out1 = conv(w_in_ref, b_in_ref, px)                     # (16, LANES) f32
    scatter_taps(out1, _OFF_OUT1)
    out2 = conv(w_c_ref, b_c_ref, p_ref[_OFF_OUT1:_OFF_OUT1 + _R16, :])
    scatter_taps(out2, _OFF_OUT2)
    out3 = conv(w_c_ref, b_c_ref, p_ref[_OFF_OUT2:_OFF_OUT2 + _R16, :])
    scatter_taps(out3, _OFF_OUT3)

    # --- block 2 (conv1 over E_1 = P[928:1392], never materialized) ------------
    out4 = conv(w1_ref, b1_ref, p_ref[_E1_OFF:_P_ROWS, :])
    scatter_taps(out4, _OFF_OUT4)
    out5 = conv(w_c_ref, b_c_ref, p_ref[_OFF_OUT4:_OFF_OUT4 + _R16, :])
    scatter_taps(out5, _OFF_OUT5)
    out6 = conv(w_c_ref, b_c_ref, p_ref[_OFF_OUT5:_OFF_OUT5 + _R16, :])
    scatter_taps(out6, _OFF_OUT6)

    # --- block 3 (conv2 over E_2 = P[464:1392]) --------------------------------
    out7 = conv(w2_ref, b2_ref, p_ref[_E2_OFF:_P_ROWS, :])
    scatter_taps(out7, _OFF_OUT7)
    out8 = conv(w_c_ref, b_c_ref, p_ref[_OFF_OUT7:_OFF_OUT7 + _R16, :])
    scatter_taps(out8, _OFF_OUT8)
    out9 = conv(w_c_ref, b_c_ref, p_ref[_OFF_OUT8:_OFF_OUT8 + _R16, :])
    scatter_taps(out9, _OFF_OUT9)

    # --- output conv over E_3 = all of P, no ReLU, plus residual ---------------
    out = conv(w_o_ref, b_o_ref, p_ref[0:_P_ROWS, :], relu=False) + x
    o_ref[0] = out.astype(o_ref.dtype)


# ----------------------------------------------------------------------------
# Weight packing: torch OIHW (Cout, Cin, 3, 3) -> (Cout, K) matching the
# tap-major row order of the patch buffer, with zero columns for the
# alignment-pad rows of the x segments.  Cast to the MXU compute dtype.
# ----------------------------------------------------------------------------
def _flat_tapmajor(w):
    cout, cin = w.shape[0], w.shape[1]
    return jnp.transpose(w, (0, 2, 3, 1)).reshape(cout, 9 * cin)


def _pack_weight(w, chunk_cins, pad_rows, dtype):
    cout = w.shape[0]
    cols, c0 = [], 0
    for cin, rows in zip(chunk_cins, pad_rows):
        blk = _flat_tapmajor(w[:, c0:c0 + cin])
        if rows > 9 * cin:
            blk = jnp.concatenate(
                [blk, jnp.zeros((cout, rows - 9 * cin), blk.dtype)], axis=1)
        cols.append(blk)
        c0 += cin
    return jnp.concatenate(cols, axis=1).astype(dtype)


# ----------------------------------------------------------------------------
# Public forward.  Accepts / returns PyTorch-style NCHW.
# ----------------------------------------------------------------------------
def uwcnn_forward(x_nchw, params, *, batch_tile=None,
                  compute_dtype=jnp.bfloat16):
    """UWCNN forward, one fused Pallas kernel.

    batch_tile: images packed into the lane axis per grid step.  Default picks
      the widest tile dividing N with lane width ~512 (best on single-TC
      v5e/v6e).  On v7x with N > 1, pass batch_tile=1 (or N//2) so the
      "parallel" batch grid axis uses both TensorCores.
    compute_dtype: dtype of the patch buffer / packed weights fed to the MXU
      (bf16 recommended on v6e/v7x; f32 on v5e if the VPU is the bottleneck).
    """
    N, C, H, W = x_nchw.shape
    HW = H * W

    if batch_tile is None:
        batch_tile = 1
        for bt in range(min(N, max(1, 512 // HW)), 0, -1):
            if N % bt == 0:
                batch_tile = bt
                break
    assert N % batch_tile == 0, (N, batch_tile)
    G = N // batch_tile
    LANES = batch_tile * HW

    roll_sign = _resolve_roll_sign()

    w_in, b_in = params["conv_in"]
    w_c, b_c = params["conv"]
    w1, b1 = params["conv1"]
    w2, b2 = params["conv2"]
    w_o, b_o = params["conv_out"]

    grp = [16, 16, 16, 3]                       # channel layout of one E group
    pads = [_R16, _R16, _R16, _RX]
    w_in_p = _pack_weight(w_in, [3], [_RX], compute_dtype)        # (16, 32)
    w_c_p = _pack_weight(w_c, [16], [_R16], compute_dtype)        # (16, 144)
    w1_p = _pack_weight(w1, grp, pads, compute_dtype)             # (16, 464)
    w2_p = _pack_weight(w2, grp * 2, pads * 2, compute_dtype)     # (16, 928)
    w_o_p = _pack_weight(w_o, grp * 3, pads * 3, compute_dtype)   # (3, 1392)

    b_in2, b_c2, b12, b22, b_o2 = (
        b.reshape(-1, 1).astype(jnp.float32)
        for b in (b_in, b_c, b1, b2, b_o))

    # Lane layout: lane = (image within tile)*HW + h*W + w.  Wrapper-side
    # transpose is layout plumbing that keeps the kernel lane-dense.
    x_flat = (x_nchw.astype(jnp.float32)
              .reshape(G, batch_tile, C, HW)
              .transpose(0, 2, 1, 3)
              .reshape(G, C, LANES))

    def _bcast(arr):
        nd = arr.ndim
        return pl.BlockSpec(arr.shape, lambda g, _nd=nd: (0,) * _nd)

    kern = functools.partial(_uwcnn_kernel, H=H, W=W, btile=batch_tile,
                             roll_sign=roll_sign, cdtype=compute_dtype)
    out = pl.pallas_call(
        kern,
        out_shape=jax.ShapeDtypeStruct((G, C, LANES), jnp.float32),
        grid=(G,),
        in_specs=[
            pl.BlockSpec((1, C, LANES), lambda g: (g, 0, 0)),
            _bcast(w_in_p), _bcast(b_in2),
            _bcast(w_c_p), _bcast(b_c2),
            _bcast(w1_p), _bcast(b12),
            _bcast(w2_p), _bcast(b22),
            _bcast(w_o_p), _bcast(b_o2),
        ],
        out_specs=pl.BlockSpec((1, C, LANES), lambda g: (g, 0, 0)),
        scratch_shapes=[pltpu.VMEM((_P_ROWS, LANES), compute_dtype)],
        compiler_params=pltpu.CompilerParams(
            dimension_semantics=("parallel",),
            vmem_limit_bytes=32 * 1024 * 1024),
    )(x_flat, w_in_p, b_in2, w_c_p, b_c2, w1_p, b12, w2_p, b22, w_o_p, b_o2)

    out = (out.reshape(G, C, batch_tile, HW)
              .transpose(0, 2, 1, 3)
              .reshape(N, C, H, W))
    return out.astype(x_nchw.dtype)


# ----------------------------------------------------------------------------
# Parameter construction (deterministic, synthetic).  Weights stored OIHW
# like torch.nn.Conv2d; the single `conv` (16->16) is shared 6x, as in the
# reference module.
# ----------------------------------------------------------------------------
def init_params(key):
    defs = {
        "conv_in": (3, 16),
        "conv": (16, 16),
        "conv1": (51, 16),
        "conv2": (102, 16),
        "conv_out": (153, 3),
    }
    params = {}
    for name, (cin, cout) in defs.items():
        key, kw, kb = jax.random.split(key, 3)
        scale = (2.0 / (9 * cin)) ** 0.5
        w = scale * jax.random.normal(kw, (cout, cin, 3, 3), jnp.float32)
        b = 0.01 * jax.random.normal(kb, (cout,), jnp.float32)
        params[name] = (w, b)
    return params


# ----------------------------------------------------------------------------
# Pure-JAX (XLA conv) reference, mirroring the PyTorch module exactly.
# ----------------------------------------------------------------------------
def _conv2d_ref(x, w, b):
    y = jax.lax.conv_general_dilated(
        x, w, window_strides=(1, 1), padding=[(1, 1), (1, 1)],
        dimension_numbers=("NCHW", "OIHW", "NCHW"),
        precision=jax.lax.Precision.HIGHEST)
    return y + b.reshape(1, -1, 1, 1)


def uwcnn_reference(x, params):
    relu = lambda t: jnp.maximum(t, 0.0)
    w_in, b_in = params["conv_in"]
    w_c, b_c = params["conv"]
    w1, b1 = params["conv1"]
    w2, b2 = params["conv2"]
    w_o, b_o = params["conv_out"]

    out1 = relu(_conv2d_ref(x, w_in, b_in))
    out2 = relu(_conv2d_ref(out1, w_c, b_c))
    out3 = relu(_conv2d_ref(out2, w_c, b_c))
    e1 = jnp.concatenate([out1, out2, out3, x], axis=1)
    out4 = relu(_conv2d_ref(e1, w1, b1))
    out5 = relu(_conv2d_ref(out4, w_c, b_c))
    out6 = relu(_conv2d_ref(out5, w_c, b_c))
    e2 = jnp.concatenate([out4, out5, out6, x, e1], axis=1)
    out7 = relu(_conv2d_ref(e2, w2, b2))
    out8 = relu(_conv2d_ref(out7, w_c, b_c))
    out9 = relu(_conv2d_ref(out8, w_c, b_c))
    e3 = jnp.concatenate([out7, out8, out9, x, e2], axis=1)
    return _conv2d_ref(e3, w_o, b_o) + x


if __name__ == "__main__":
    key = jax.random.PRNGKey(0)
    key, kx = jax.random.split(key)

    # PyTorch NCHW convention: (N=2, C=3, H=16, W=16); two images are packed
    # into one grid step -> lane width 512.
    x = jax.random.normal(kx, (2, 3, 16, 16), jnp.float32)
    params = init_params(key)

    _resolve_roll_sign()                 # warm the probe cache outside any jit

    fwd = jax.jit(uwcnn_forward)
    y = fwd(x, params)
    jax.block_until_ready(y)

    assert y.shape == (2, 3, 16, 16), y.shape
    assert y.dtype == jnp.float32

    y_ref = uwcnn_reference(x, params)
    err = float(jnp.max(jnp.abs(y - y_ref)))
    assert err < 1e-1, f"kernel/reference mismatch: max abs err = {err}"
    print("KERNEL_OK")
</pallas_src>

<mosaic_0001>
module attributes {stable_mosaic.version = 11 : i64} {
  func.func @probe_kernel(%arg0: memref<8x128xf32, #tpu.memory_space<vmem>>, %arg1: memref<8x128xf32, #tpu.memory_space<vmem>>) attributes {dimension_semantics = [], scalar_prefetch = 0 : i64, scratch_operands = 0 : i64, tpu.core_type = #tpu.core_type<tc>} {
    %c0 = arith.constant 0 : index
    %c0_0 = arith.constant 0 : index
    %0 = vector.load %arg0[%c0, %c0_0] : memref<8x128xf32, #tpu.memory_space<vmem>>, vector<8x128xf32>
    %c1_i32 = arith.constant 1 : i32
    %1 = tpu.dynamic_rotate %0 by %c1_i32 dim 1 : vector<8x128xf32>, i32 -> vector<8x128xf32>
    %c0_1 = arith.constant 0 : index
    %c0_2 = arith.constant 0 : index
    %2 = vector.load %arg1[%c0_1, %c0_2] : memref<8x128xf32, #tpu.memory_space<vmem>>, vector<8x128xf32>
    tpu.vector_store %arg1[%c0_1, %c0_2], %1 {strides = array<i32>} : memref<8x128xf32, #tpu.memory_space<vmem>>, vector<8x128xf32>,
    return
  }
}

</mosaic_0001>

<bundles_post_ra>
// kernel: tpu_custom_call.1
= control target key start
LH: loop header
LB: loop body
LE: loop exit
PB: predicated region body
PF: predicated region fallthrough
CT: control target
= control target key end

     0   :  { %6 = vsyncpa [#allocation3], 0  ;;  %s106_s0 = inlined_call_operand.hbm [shape: f32[8,128], index: 0, kind: input, shape index: {}]   ;;  %s107_s1 = inlined_call_operand.hbm [shape: f32[8,128], index: 1, kind: output, shape index: {}]  }
   0x1   :  { %7 = vsyncpa [#allocation4], 0  ;;  %s87_s6 = smov [#allocation2]  }
   0x2   :  { %s14_s7 = sshll.u32 %s87_s6, 4  ;;  %s15_s7 = int_to_ptr.vmem [resolvable:$true] %s14_s7 }
   0x3   :  { %s51_s8 = scalar_lea.vmem %s15_s7, 128  ;;  %p56_p1 = scmp.lt.s32.totalorder %s15_s7, %s15_s7 }
   0x4   :  { %p52_p0 = scmp.ne.s32.totalorder %s15_s7, %s51_s8  ;;  %p57_p2 = scmp.lt.s32.totalorder %s51_s8, %s51_s8 }
   0x6   :  { %p58_p3 = por %p57_p2, %p56_p1 }
   0x8   :  { %p59_p4 = pnand %p58_p3, %p52_p0 }
   0xa   :  { %62 = shalt.err (!%p59_p4)
}
   0xb   :  { %17 = dma.hbm_to_vmem [thread:$0]  %s106_s0, 128, %s15_s7, [#allocation3]  }
   0xc   :  { %83 = dma.done.wait [#allocation3], 128  }
   0xd   :  { %84 = vsyncadd [#allocation3], 4294967168  ;;  %v21_v0 = vld [vmem:[#allocation2] sm:$0xff]  ;;  %s88_s11 = smov 1   ;;  %s89_s12 = smov [#allocation5]  }
   0xe   :  { %22 = vrot.lane.b32.xlu0 %v21_v0, %s88_s11  ;;  %s31_s13 = sshll.u32 %s89_s12, 4  ;;  %s32_s13 = int_to_ptr.vmem [resolvable:$true] %s31_s13 }
   0xf   :  { %s63_s14 = scalar_lea.vmem %s32_s13, 128  ;;  %p68_p6 = scmp.lt.s32.totalorder %s32_s13, %s32_s13 }
  0x10   :  { %p64_p5 = scmp.ne.s32.totalorder %s32_s13, %s63_s14  ;;  %p69_p7 = scmp.lt.s32.totalorder %s63_s14, %s63_s14 }
  0x12   :  { %p70_p8 = por %p69_p7, %p68_p6 }
  0x14   :  { %p71_p9 = pnand %p70_p8, %p64_p5 }
  0x80   :  { %v23_v1 = vpop.permute.xlu0 %22 }
  0x81   :  { %24 = vst [vmem:[#allocation5] sm:$0xff] %v23_v1 }
  0x82   :  { %74 = shalt.err (!%p71_p9)
}
  0x83   :  { %34 = dma.vmem_to_hbm [thread:$0]  %s32_s13, 128, %s107_s1, [#allocation4]  }
  0x84   :  { %85 = dma.done.wait [#allocation4], 128  }
  0x85   :  { %86 = vsyncadd [#allocation4], 4294967168 }
  0x86   :  { %38 = vsyncpa [#allocation3], 1 }
  0x87   :  { %39 = vsyncpa [#allocation4], 1 }

</bundles_post_ra>
